<compile_context>
chip_gen: v7x
topology: tpu7x:2x2x1
jax: 0.10.0
libtpu: 0.0.40
codegen_flags: <defaults>
</compile_context>

<pallas_src>
import jax
import jax.numpy as jnp
from jax.experimental import pallas as pl
from jax.experimental.pallas import tpu as pltpu


def _conv_bn_silu_kernel(w_ref, p_ref, o_ref):
    """Single invocation, whole batch.

    w_ref: (Cout, K+1)     BN-folded conv weight with bias as last column
    p_ref: (N, K+1, HW)    im2col patches with a trailing ones row (bias)
    o_ref: (N, Cout, HW)   output (lane-dense: HW on lanes)
    """
    w = w_ref[...]
    n_batch = p_ref.shape[0]
    # Unrolled static loop (N=2): MXU matmul per batch element, f32 accumulate.
    for n in range(n_batch):
        y = jnp.dot(w, p_ref[n], preferred_element_type=jnp.float32)
        # Fused SiLU epilogue in f32 (bias already in the matmul).
        o_ref[n] = (y * jax.nn.sigmoid(y)).astype(o_ref.dtype)


def conv_bn_silu_nchw(x_nchw, weight_oihw, gamma, beta, running_mean, running_var,
                      eps=1e-5, stride=1, padding=1):
    """Pallas equivalent of Conv.forward: act(bn(conv(x))). Inputs/outputs NCHW."""
    assert stride == 1, "this kernel realizes the default stride=1 configuration"
    N, Cin, H, W = x_nchw.shape
    Cout, Cin_w, KH, KW = weight_oihw.shape
    assert Cin == Cin_w
    HW = H * W
    K = Cin * KH * KW

    x = x_nchw.astype(jnp.float32)

    # --- im2col in the wrapper (stays NCHW; no transposes anywhere) ---
    # patches[n, cin*KH*KW + kh*KW + kw, h*W + w] = x_pad[n, cin, h+kh, w+kw]
    x_pad = jnp.pad(x, ((0, 0), (0, 0), (padding, padding), (padding, padding)))
    cols = [x_pad[:, :, kh:kh + H, kw:kw + W]
            for kh in range(KH) for kw in range(KW)]              # each (N, Cin, H, W)
    patches = jnp.stack(cols, axis=2)                             # (N, Cin, KH*KW, H, W)
    patches = patches.reshape(N, K, HW)                           # feature idx matches weight
    # Ones row so the folded-BN bias rides the same MXU pass (K -> K+1).
    patches_aug = jnp.concatenate(
        [patches, jnp.ones((N, 1, HW), jnp.float32)], axis=1)     # (N, K+1, HW)

    # --- fold BatchNorm (eval) into weights / bias column ---
    scale = (gamma / jnp.sqrt(running_var + eps)).astype(jnp.float32)          # (Cout,)
    w2d = weight_oihw.astype(jnp.float32).reshape(Cout, K) * scale[:, None]    # (Cout, K)
    bias = (beta.astype(jnp.float32) - running_mean.astype(jnp.float32) * scale)
    w_aug = jnp.concatenate([w2d, bias[:, None]], axis=1)                      # (Cout, K+1)
    # TODO(synk): for large shapes cast w_aug/patches_aug to bf16 here (keep f32 accumulate).

    out_flat = pl.pallas_call(
        _conv_bn_silu_kernel,
        out_shape=jax.ShapeDtypeStruct((N, Cout, HW), jnp.float32),
        in_specs=[
            pl.BlockSpec(memory_space=pltpu.MemorySpace.VMEM),
            pl.BlockSpec(memory_space=pltpu.MemorySpace.VMEM),
        ],
        out_specs=pl.BlockSpec(memory_space=pltpu.MemorySpace.VMEM),
    )(w_aug, patches_aug)

    # (N, Cout, H*W) -> (N, Cout, H, W): pure reshape, no transpose.
    return out_flat.reshape(N, Cout, H, W)


if __name__ == "__main__":
    # Module config: Conv(c1=4, c2=8, k=3, s=1) -> autopad gives p=1.
    N, Cin, H, W = 2, 4, 16, 16
    Cout, Kk = 8, 3

    key = jax.random.PRNGKey(0)
    kx, kw, kg, kb, km, kv = jax.random.split(key, 6)

    x = jax.random.normal(kx, (N, Cin, H, W), dtype=jnp.float32)
    weight = jax.random.normal(kw, (Cout, Cin, Kk, Kk), dtype=jnp.float32) * 0.1
    gamma = 1.0 + 0.1 * jax.random.normal(kg, (Cout,), dtype=jnp.float32)
    beta = 0.1 * jax.random.normal(kb, (Cout,), dtype=jnp.float32)
    running_mean = 0.1 * jax.random.normal(km, (Cout,), dtype=jnp.float32)
    running_var = jnp.abs(1.0 + 0.1 * jax.random.normal(kv, (Cout,), dtype=jnp.float32))

    out = conv_bn_silu_nchw(x, weight, gamma, beta, running_mean, running_var)
    out = jax.block_until_ready(out)

    # Sanity check against pure-JAX reference (conv + BN(eval) + SiLU).
    ref = jax.lax.conv_general_dilated(
        x, weight, window_strides=(1, 1), padding=((1, 1), (1, 1)),
        dimension_numbers=("NCHW", "OIHW", "NCHW"))
    scale = gamma / jnp.sqrt(running_var + 1e-5)
    ref = ref * scale[None, :, None, None] + (beta - running_mean * scale)[None, :, None, None]
    ref = ref * jax.nn.sigmoid(ref)
    assert out.shape == (N, Cout, H, W)
    assert jnp.allclose(out, ref, atol=1e-4, rtol=1e-4)

    print("KERNEL_OK")
</pallas_src>

<mosaic_0001>
module attributes {stable_mosaic.version = 11 : i64} {
  func.func @_conv_bn_silu_kernel(%arg0: memref<8x37xf32, #tpu.memory_space<vmem>>, %arg1: memref<2x37x256xf32, #tpu.memory_space<vmem>>, %arg2: memref<2x8x256xf32, #tpu.memory_space<vmem>>) attributes {dimension_semantics = [], scalar_prefetch = 0 : i64, scratch_operands = 0 : i64, tpu.core_type = #tpu.core_type<tc>} {
    %c0 = arith.constant 0 : index
    %c0_0 = arith.constant 0 : index
    %0 = vector.load %arg0[%c0, %c0_0] : memref<8x37xf32, #tpu.memory_space<vmem>>, vector<8x37xf32>
    %c0_1 = arith.constant 0 : index
    %c0_2 = arith.constant 0 : index
    %c0_3 = arith.constant 0 : index
    %1 = vector.load %arg1[%c0_1, %c0_2, %c0_3] : memref<2x37x256xf32, #tpu.memory_space<vmem>>, vector<1x37x256xf32>
    %2 = vector.shape_cast %1 : vector<1x37x256xf32> to vector<37x256xf32>
    %cst = arith.constant dense<0.000000e+00> : vector<8x256xf32>
    %3 = tpu.matmul %0, %2, %cst {dimension_numbers = #tpu.dot_dimension_numbers<[1], [0], [0], [1], [0, 0, 1, 1], [], []>} : vector<8x37xf32>, vector<37x256xf32>, vector<8x256xf32> -> vector<8x256xf32>
    %4 = arith.negf %3 : vector<8x256xf32>
    %5 = math.exp %4 : vector<8x256xf32>
    %cst_4 = arith.constant 1.000000e+00 : f32
    %6 = vector.broadcast %cst_4 : f32 to vector<8x256xf32>
    %7 = arith.addf %6, %5 : vector<8x256xf32>
    %8 = arith.divf %6, %7 : vector<8x256xf32>
    %9 = arith.mulf %3, %8 : vector<8x256xf32>
    %c0_5 = arith.constant 0 : index
    %c0_6 = arith.constant 0 : index
    %c0_7 = arith.constant 0 : index
    %10 = vector.load %arg2[%c0_5, %c0_6, %c0_7] : memref<2x8x256xf32, #tpu.memory_space<vmem>>, vector<1x8x256xf32>
    %11 = vector.shape_cast %10 : vector<1x8x256xf32> to vector<8x256xf32>
    %12 = vector.shape_cast %9 : vector<8x256xf32> to vector<1x8x256xf32>
    tpu.vector_store %arg2[%c0_5, %c0_6, %c0_7], %12 {strides = array<i32>} : memref<2x8x256xf32, #tpu.memory_space<vmem>>, vector<1x8x256xf32>,
    %c1 = arith.constant 1 : index
    %c0_8 = arith.constant 0 : index
    %c0_9 = arith.constant 0 : index
    %13 = vector.load %arg1[%c1, %c0_8, %c0_9] : memref<2x37x256xf32, #tpu.memory_space<vmem>>, vector<1x37x256xf32>
    %14 = vector.shape_cast %13 : vector<1x37x256xf32> to vector<37x256xf32>
    %cst_10 = arith.constant dense<0.000000e+00> : vector<8x256xf32>
    %15 = tpu.matmul %0, %14, %cst_10 {dimension_numbers = #tpu.dot_dimension_numbers<[1], [0], [0], [1], [0, 0, 1, 1], [], []>} : vector<8x37xf32>, vector<37x256xf32>, vector<8x256xf32> -> vector<8x256xf32>
    %16 = arith.negf %15 : vector<8x256xf32>
    %17 = math.exp %16 : vector<8x256xf32>
    %cst_11 = arith.constant 1.000000e+00 : f32
    %18 = vector.broadcast %cst_11 : f32 to vector<8x256xf32>
    %19 = arith.addf %18, %17 : vector<8x256xf32>
    %20 = arith.divf %18, %19 : vector<8x256xf32>
    %21 = arith.mulf %15, %20 : vector<8x256xf32>
    %c1_12 = arith.constant 1 : index
    %c0_13 = arith.constant 0 : index
    %c0_14 = arith.constant 0 : index
    %22 = vector.load %arg2[%c1_12, %c0_13, %c0_14] : memref<2x8x256xf32, #tpu.memory_space<vmem>>, vector<1x8x256xf32>
    %23 = vector.shape_cast %22 : vector<1x8x256xf32> to vector<8x256xf32>
    %24 = vector.shape_cast %21 : vector<8x256xf32> to vector<1x8x256xf32>
    tpu.vector_store %arg2[%c1_12, %c0_13, %c0_14], %24 {strides = array<i32>} : memref<2x8x256xf32, #tpu.memory_space<vmem>>, vector<1x8x256xf32>,
    return
  }
}

</mosaic_0001>

<bundles_post_ra>
// kernel: tpu_custom_call.1
= control target key start
LH: loop header
LB: loop body
LE: loop exit
PB: predicated region body
PF: predicated region fallthrough
CT: control target
= control target key end

     0   :  { %v322_v7 = vmov 0.0   ;;  %vm27_vm0 = vcmask 1044480   ;;  %s416_s0 = inlined_call_operand.vmem [shape: f32[8,37], index: 0, kind: input, shape index: {}]   ;;  %s417_s1 = inlined_call_operand.vmem [shape: f32[2,37,256], index: 1, kind: input, shape index: {}]   ;;  %s418_s2 = inlined_call_operand.hbm [shape: f32[2,8,256], index: 2, kind: output, shape index: {}]  }
   0x1   :  { %v14_v0 = vld [vmem:[%s417_s1 + $0x8] sm:$0xff]  ;;  %v16_v1 = vld [vmem:[%s417_s1 + $0x18] sm:$0xff]  ;;  %v13_v5 = vld [vmem:[%s417_s1] sm:$0xff]  ;;  %98 = vmatprep.mubr.f32.mxu0 %v322_v7  ;;  %202 = vmatprep.mubr.f32.mxu1 %v322_v7 }
   0x2   :  { %v248_v2 = vld [vmem:[%s417_s1 + $0x58] sm:$0xff]  ;;  %v262_v3 = vpack.c.bf16 %v16_v1, %v14_v0  ;;  %v250_v4 = vld [vmem:[%s417_s1 + $0x68] sm:$0xff]  ;;  %v15_v6 = vld [vmem:[%s417_s1 + $0x10] sm:$0xff] }
   0x3   :  { %v270_v8 = vpack.c.bf16 %v250_v4, %v248_v2  ;;  %v264_v9 = vpack.c.bf16 %v15_v6, %v13_v5  ;;  %v247_v10 = vld [vmem:[%s417_s1 + $0x50] sm:$0xff]  ;;  %v249_v11 = vld [vmem:[%s417_s1 + $0x60] sm:$0xff]  ;;  %v18_v12 = vld [vmem:[%s417_s1 + $0x28] sm:$0xff] }
   0x4   :  { %263 = vmatprep.subr.bf16.mxu0 %v262_v3  ;;  %v272_v13 = vpack.c.bf16 %v249_v11, %v247_v10  ;;  %v20_v14 = vld [vmem:[%s417_s1 + $0x38] sm:$0xff]  ;;  %v254_v16 = vld [vmem:[%s417_s1 + $0x88] sm:$0xff]  ;;  %v17_v19 = vld [vmem:[%s417_s1 + $0x20] sm:$0xff] }
   0x5   :  { %v252_v15 = vld [vmem:[%s417_s1 + $0x78] sm:$0xff]  ;;  %271 = vmatprep.subr.bf16.mxu1 %v270_v8  ;;  %265 = vmatpush1.bf16.msra.mxu0 %v264_v9  ;;  %v266_v17 = vpack.c.bf16 %v20_v14, %v18_v12  ;;  %v19_v20 = vld [vmem:[%s417_s1 + $0x30] sm:$0xff]  ;;  %v253_v23 = vld [vmem:[%s417_s1 + $0x80] sm:$0xff] }
   0x6   :  { %v274_v18 = vpack.c.bf16 %v254_v16, %v252_v15  ;;  %v251_v21 = vld [vmem:[%s417_s1 + $0x70] sm:$0xff]  ;;  %273 = vmatpush1.bf16.msra.mxu1 %v272_v13  ;;  %v268_v22 = vpack.c.bf16 %v19_v20, %v17_v19  ;;  %v22_v25 = vld [vmem:[%s417_s1 + $0x48] sm:$0x1f]  ;;  %v256_v26 = vld [vmem:[%s417_s1 + $0x98] sm:$0x1f] }
   0x7   :  { %267 = vmatprep.subr.bf16.mxu0 %v266_v17  ;;  %v276_v24 = vpack.c.bf16 %v253_v23, %v251_v21 }
   0x8   :  { %275 = vmatprep.subr.bf16.mxu1 %v274_v18 }
   0x9   :  { %7 = vsyncpa [#allocation3], 0  ;;  %269 = vmatpush1.bf16.msra.mxu0 %v268_v22  ;;  %v21_v27 = vld [vmem:[%s417_s1 + $0x40] sm:$0x1f]  ;;  %v255_v28 = vld [vmem:[%s417_s1 + $0x90] sm:$0x1f] }
   0xa   :  { %277 = vmatpush1.bf16.msra.mxu1 %v276_v24  ;;  %242 = vmatprep.subr.msk.mxu0 %vm27_vm0, %v22_v25  ;;  %v12_v29 = vld [vmem:[%s416_s0] sm:$0xff]  ;;  %vm23_vm1 = vcmask 302080   ;;  %s323_s0 = smov [#allocation2]  }
   0xb   :  { %257 = vmatprep.subr.msk.mxu1 %vm27_vm0, %v256_v26  ;;  %s231_s1 = sshll.u32 %s323_s0, 4  ;;  %s232_s1 = int_to_ptr.vmem [resolvable:$true] %s231_s1 }
   0xc   :  { %s298_s23 = scalar_lea.vmem %s232_s1, 512  ;;  %p303_p1 = scmp.lt.s32.totalorder %s232_s1, %s232_s1 }
   0xd   :  { %243 = vmatpush1.msk.msra.mxu0 %vm27_vm0, %v21_v27  ;;  %p299_p0 = scmp.ne.s32.totalorder %s232_s1, %s298_s23  ;;  %p304_p2 = scmp.lt.s32.totalorder %s298_s23, %s298_s23 }
   0xe   :  { %258 = vmatpush1.msk.msra.mxu1 %vm27_vm0, %v255_v28  ;;  %244 = vmatmul.mubr.msk.f32.vlgmr.msra.gmra.mrb[0].mxu0 %vm23_vm1, %v12_v29 }
   0xf   :  { %259 = vmatmul.mubr.msk.f32.vlgmr.msra.gmra.mrb[0].mxu1 %vm23_vm1, %v12_v29  ;;  %p305_p3 = por %p304_p2, %p303_p1 }
  0x11   :  { %p306_p4 = pnand %p305_p3, %p299_p0 }
  0xe1   :  { %v100_v30 = vpop.f32.mrb[0].mxu0 }
  0xe2   :  { %v245_v31 = vmul.f32 -1.442695, %v100_v30  ;;  %v204_v32 = vpop.f32.mrb[0].mxu1  ;;  %v102_v33 = vpop.f32.mrb[1].mxu0 }
  0xe3   :  { %v260_v34 = vmul.f32 -1.442695, %v204_v32  ;;  %v246_v35 = vmul.f32 -1.442695, %v102_v33  ;;  %v206_v36 = vpop.f32.mrb[1].mxu1 }
  0xe4   :  { %282 = vpow2.f32 %v245_v31  ;;  %v261_v37 = vmul.f32 -1.442695, %v206_v36 }
  0xe5   :  { %284 = vpow2.f32 %v260_v34 }
  0xe6   :  { %286 = vpow2.f32 %v246_v35 }
  0xe7   :  { %288 = vpow2.f32 %v261_v37 }
  0xee   :  { %v283_v38 = vpop.eup %282 }
  0xef   :  { %v285_v39 = vpop.eup %284  ;;  %v111_v40 = vadd.f32 1.0, %v283_v38 }
  0xf0   :  { %v287_v41 = vpop.eup %286  ;;  %v215_v42 = vadd.f32 1.0, %v285_v39 }
  0xf1   :  { %v289_v43 = vpop.eup %288  ;;  %290 = vrcp.f32 %v111_v40  ;;  %v112_v44 = vadd.f32 1.0, %v287_v41 }
  0xf2   :  { %292 = vrcp.f32 %v215_v42  ;;  %v216_v45 = vadd.f32 1.0, %v289_v43 }
  0xf3   :  { %294 = vrcp.f32 %v112_v44 }
  0xf4   :  { %296 = vrcp.f32 %v216_v45 }
  0xfb   :  { %v291_v46 = vpop.eup %290 }
  0xfc   :  { %v293_v47 = vpop.eup %292  ;;  %v117_v48 = vmul.f32 %v291_v46, %v100_v30 }
  0xfd   :  { %v295_v49 = vpop.eup %294  ;;  %v221_v50 = vmul.f32 %v293_v47, %v204_v32 }
  0xfe   :  { %v297_v51 = vpop.eup %296  ;;  %119 = vst [vmem:[#allocation2] sm:$0xff] %v117_v48  ;;  %v118_v52 = vmul.f32 %v295_v49, %v102_v33 }
  0xff   :  { %224 = vst [vmem:[#allocation2 + $0x10] sm:$0xff] %v221_v50  ;;  %v222_v53 = vmul.f32 %v297_v51, %v206_v36 }
 0x100   :  { %120 = vst [vmem:[#allocation2 + $0x8] sm:$0xff] %v118_v52 }
 0x101   :  { %225 = vst [vmem:[#allocation2 + $0x18] sm:$0xff] %v222_v53 }
 0x102   :  { %309 = shalt.err (!%p306_p4)
}
 0x103   :  { %s310_s26 = scalar_lea.hbm %s418_s2, 512 }
 0x104   :  { %p311_p5 = scmp.ne.s32.totalorder %s418_s2, %s310_s26  ;;  %p314_p6 = scmp.lt.u32.totalorder %s310_s26, %s418_s2 }
 0x106   :  { %p316_p7 = pnand %p314_p6, %p311_p5 }
 0x108   :  { %319 = shalt.err (!%p316_p7)
}
 0x109   :  { %s324_s3 = smov 256   ;;  %s325_s4 = smov 16  }
 0x10a   :  { %237 = dma.vmem_to_hbm [thread:$0]  %s232_s1, 512, %s418_s2, [#allocation3], %s324_s3, %s324_s3, %s325_s4  }
 0x10b   :  { %320 = dma.done.wait [#allocation3], 512  }
 0x10c   :  { %321 = vsyncadd [#allocation3], 4294966784 }
 0x10d   :  { %241 = vsyncpa [#allocation3], 1 }

</bundles_post_ra>
